<compile_context>
chip_gen: v6e
topology: v6e:2x2x1
jax: 0.10.0
libtpu: 0.0.40
codegen_flags: <defaults>
</compile_context>

<pallas_src>
import functools

import jax
import jax.numpy as jnp
from jax.experimental import pallas as pl
from jax.experimental.pallas import tpu as pltpu


def _round_up(x, m):
    return (x + m - 1) // m * m


def _dcn_kernel(d0, off2, num_cross, mlp_dims, r_cross, r_mlp, r_wfc, r_wfm,
                idx_ref, embT_ref, mats_ref, vecs_ref, out_ref):
    """One batch tile of TB rows, batch on lanes.

    idx_ref  : (2, TB)   int32   -- row 0 = field-1 ids, row 1 = field-2 ids
    embT_ref : (D0, Vtot) bf16   -- block-placed transposed embedding tables
    mats_ref : (R, Wm)   bf16    -- packed matmul weights (cross / MLP / final)
    vecs_ref : (Rv, Cv)  f32     -- packed bias vectors (cross b / MLP b / bf)
    out_ref  : (1, TB)   f32
    """
    vtot = embT_ref.shape[1]
    tb = idx_ref.shape[1]
    n_mlp = len(mlp_dims)

    # ---- fused embedding gather + concat -----------------------------------
    # one-hot over the stacked vocab (VPU), then a single lane-dense bf16 MXU
    # matmul against the block-placed transposed tables.
    row = jax.lax.broadcasted_iota(jnp.int32, (vtot, tb), 0)
    i1 = idx_ref[0:1, :]                                   # field 1 -> cols [0, v1)
    i2 = idx_ref[1:2, :] + off2                            # field 2 -> cols [v1, v1+v2)
    hit = jnp.logical_or(row == i1, row == i2)
    onehot = hit.astype(jnp.float32).astype(jnp.bfloat16)  # (Vtot, TB), exact in bf16
    x0 = jnp.dot(embT_ref[...], onehot,
                 preferred_element_type=jnp.float32)       # (D0, TB) f32

    # ---- CrossNetwork: x_{l+1} = x0 * (w_l . x_l) + b_l + x_l ---------------
    x = x0
    for l in range(num_cross):
        w_l = mats_ref[r_cross + l:r_cross + l + 1, 0:d0]          # (1, D0) bf16
        b_l = vecs_ref[0:d0, l:l + 1]                              # (D0, 1) f32
        xw = jnp.dot(w_l, x.astype(jnp.bfloat16),
                     preferred_element_type=jnp.float32)           # (1, TB)
        x = x0 * xw + b_l + x

    # ---- MLP: Linear + folded inference BatchNorm + ReLU (dropout = id) ----
    h = x0
    prev = d0
    for l in range(n_mlp):
        hdim = mlp_dims[l]
        wT = mats_ref[r_mlp[l]:r_mlp[l] + hdim, 0:prev]            # (H, prev) bf16
        b = vecs_ref[0:hdim, num_cross + l:num_cross + l + 1]      # (H, 1) f32
        h = jnp.dot(wT, h.astype(jnp.bfloat16),
                    preferred_element_type=jnp.float32) + b
        h = jnp.maximum(h, 0.0)
        prev = hdim

    # ---- Final linear over cat([x, h]) without concatenating, + sigmoid ----
    hlast = mlp_dims[-1]
    wfc = mats_ref[r_wfc:r_wfc + 1, 0:d0]                          # (1, D0) bf16
    wfm = mats_ref[r_wfm:r_wfm + 1, 0:hlast]                       # (1, H_last) bf16
    bf = vecs_ref[0:1, num_cross + n_mlp:num_cross + n_mlp + 1]    # (1, 1) f32
    p = (jnp.dot(wfc, x.astype(jnp.bfloat16),
                 preferred_element_type=jnp.float32)
         + jnp.dot(wfm, h.astype(jnp.bfloat16),
                   preferred_element_type=jnp.float32)
         + bf)                                                     # (1, TB)
    out_ref[...] = jax.nn.sigmoid(p)


def init_params(key, input_dims, embed_dim, num_cross_layers, mlp_dims):
    """Deterministic synthetic parameters matching the torch module's shapes."""
    d0 = 2 * embed_dim
    ks = iter(jax.random.split(key, 64))
    p = {}
    p["emb1"] = jax.random.normal(next(ks), (input_dims[0], embed_dim),
                                  jnp.float32) * 0.1
    p["emb2"] = jax.random.normal(next(ks), (input_dims[1], embed_dim),
                                  jnp.float32) * 0.1
    p["cross_w"] = jax.random.normal(next(ks), (num_cross_layers, d0),
                                     jnp.float32) * 0.1
    p["cross_b"] = jnp.zeros((num_cross_layers, d0), jnp.float32)
    p["mlp"] = []
    prev = d0
    for h in mlp_dims:
        layer = {
            "w": jax.random.normal(next(ks), (prev, h), jnp.float32) * 0.1,
            "b": jax.random.normal(next(ks), (1, h), jnp.float32) * 0.01,
            "gamma": jnp.ones((1, h), jnp.float32),
            "beta": jnp.zeros((1, h), jnp.float32),
            "mean": jnp.zeros((1, h), jnp.float32),
            "var": jnp.ones((1, h), jnp.float32),
        }
        p["mlp"].append(layer)
        prev = h
    p["wf"] = jax.random.normal(next(ks), (d0 + mlp_dims[-1], 1),
                                jnp.float32) * 0.1
    p["bf"] = jax.random.normal(next(ks), (1, 1), jnp.float32) * 0.01
    return p


def dcn_forward_pallas(params, x1, x2, embed_dim, num_cross_layers, mlp_dims,
                       *, block_b=512, bn_eps=1e-5):
    """Pallas DCN forward.

    block_b = target batch rows per grid step (multiple of 128; 512-2048 is the
    sweet spot — per-grid-step fixed cost is ~0.35us).  The effective tile is
    capped so the batch grid has at least 2 steps (v7x megacore).
    """
    mlp_dims = tuple(mlp_dims)
    d0 = 2 * embed_dim
    e = embed_dim
    v1 = int(params["emb1"].shape[0])
    v2 = int(params["emb2"].shape[0])

    # ---- tight vocab padding: only pad the stacked total to 128 ------------
    vtot = _round_up(v1 + v2, 128)

    # ---- slab 1: transposed, block-placed embedding tables (bf16) ----------
    # rows [0:E] hold emb1^T in cols [0, v1); rows [E:2E] hold emb2^T in
    # cols [v1, v1+v2).  One matmul against a stacked one-hot reproduces
    # cat([emb1[x1], emb2[x2]], dim=1), transposed.
    # NOTE: out-of-range ids fall into zero columns -> zero embedding (torch
    # nn.Embedding would error); acceptable for inference.
    embT = jnp.zeros((d0, vtot), jnp.float32)
    embT = embT.at[:e, :v1].set(params["emb1"].T)
    embT = embT.at[e:, v1:v1 + v2].set(params["emb2"].T)
    embT = embT.astype(jnp.bfloat16)

    # ---- fold inference BN + linear bias into the (transposed) MLP weights -
    wTs, bvs = [], []
    prev = d0
    for layer in params["mlp"]:
        scale = layer["gamma"] / jnp.sqrt(layer["var"] + bn_eps)       # (1, H)
        wTs.append((layer["w"] * scale).T)                             # (H, prev)
        bvs.append(((layer["b"] - layer["mean"]) * scale
                    + layer["beta"])[0, :])                            # (H,)
        prev = layer["w"].shape[1]

    # ---- slab 2: packed matmul weights (bf16), 16-row-aligned segments -----
    align = 16
    wm = _round_up(max(d0, *mlp_dims), 128)
    r = 0
    r_cross = r
    r += _round_up(num_cross_layers, align)
    r_mlp = []
    for h in mlp_dims:
        r_mlp.append(r)
        r += _round_up(h, align)
    r_wfc = r
    r += align
    r_wfm = r
    r += align
    mats = jnp.zeros((r, wm), jnp.float32)
    mats = mats.at[r_cross:r_cross + num_cross_layers, :d0].set(params["cross_w"])
    prev = d0
    for l, h in enumerate(mlp_dims):
        mats = mats.at[r_mlp[l]:r_mlp[l] + h, :prev].set(wTs[l])
        prev = h
    mats = mats.at[r_wfc, :d0].set(params["wf"][:d0, 0])
    mats = mats.at[r_wfm, :mlp_dims[-1]].set(params["wf"][d0:, 0])
    mats = mats.astype(jnp.bfloat16)

    # ---- slab 3: packed bias vectors (f32) ----------------------------------
    n_mlp = len(mlp_dims)
    rv = _round_up(max(d0, *mlp_dims), 8)
    cv = _round_up(num_cross_layers + n_mlp + 1, 128)
    vecs = jnp.zeros((rv, cv), jnp.float32)
    vecs = vecs.at[:d0, :num_cross_layers].set(params["cross_b"].T)
    for l, h in enumerate(mlp_dims):
        vecs = vecs.at[:h, num_cross_layers + l].set(bvs[l])
    vecs = vecs.at[0, num_cross_layers + n_mlp].set(params["bf"][0, 0])

    # ---- batch tiling: big tile, but >= 2 grid steps for v7x megacore ------
    b = int(x1.shape[0])
    block_b = _round_up(max(block_b, 128), 128)
    tile = max(128, min(block_b, _round_up((b + 1) // 2, 128)))
    bp = _round_up(b, tile)
    grid_n = bp // tile

    idx = jnp.zeros((2, bp), jnp.int32)
    idx = idx.at[0, :b].set(x1.astype(jnp.int32))
    idx = idx.at[1, :b].set(x2.astype(jnp.int32))

    # ---- cost estimate (scheduler hint) -------------------------------------
    flops = 2 * d0 * vtot * bp                          # one-hot gather matmul
    flops += num_cross_layers * (2 * d0 + 3 * d0) * bp  # cross matvec + eltwise
    prev = d0
    for h in mlp_dims:
        flops += (2 * prev + 2) * h * bp
        prev = h
    flops += 2 * (d0 + mlp_dims[-1]) * bp               # final logit
    bytes_accessed = int(idx.size * 4 + bp * 4
                         + embT.size * 2 + mats.size * 2 + vecs.size * 4)
    cost = pl.CostEstimate(flops=int(flops), transcendentals=int(bp),
                           bytes_accessed=bytes_accessed)

    # Full-array block + constant index_map -> VMEM-resident across the batch
    # grid (no re-DMA per step).
    def _const_spec(a):
        return pl.BlockSpec(a.shape, lambda i: (0, 0))

    kernel = functools.partial(_dcn_kernel, d0, v1, num_cross_layers, mlp_dims,
                               r_cross, tuple(r_mlp), r_wfc, r_wfm)

    out = pl.pallas_call(
        kernel,
        grid=(grid_n,),
        out_shape=jax.ShapeDtypeStruct((1, bp), jnp.float32),
        in_specs=[
            pl.BlockSpec((2, tile), lambda i: (0, i)),      # packed indices
            _const_spec(embT),                              # embedding slab
            _const_spec(mats),                              # weight slab
            _const_spec(vecs),                              # bias slab
        ],
        out_specs=pl.BlockSpec((1, tile), lambda i: (0, i)),  # lane-dense
        compiler_params=pltpu.CompilerParams(
            dimension_semantics=("parallel",)),               # v7x: 2 TCs
        cost_estimate=cost,
    )(idx, embT, mats, vecs)
    return out[0, :b]                                       # (B,) like squeeze(1)


def dcn_forward_reference(params, x1, x2, embed_dim, num_cross_layers,
                          mlp_dims):
    """Pure-JAX f32 reference mirroring the torch forward (eval mode)."""
    bn_eps = 1e-5
    e1 = jnp.take(params["emb1"], x1, axis=0)
    e2 = jnp.take(params["emb2"], x2, axis=0)
    x0 = jnp.concatenate([e1, e2], axis=1)
    x = x0
    for l in range(num_cross_layers):
        xw = x @ params["cross_w"][l][:, None]            # (B, 1)
        x = x0 * xw + params["cross_b"][l][None, :] + x
    h = x0
    for layer in params["mlp"]:
        h = h @ layer["w"] + layer["b"]
        h = (h - layer["mean"]) / jnp.sqrt(layer["var"] + bn_eps)
        h = h * layer["gamma"] + layer["beta"]
        h = jnp.maximum(h, 0.0)
    stack = jnp.concatenate([x, h], axis=1)
    p = stack @ params["wf"] + params["bf"]
    return jax.nn.sigmoid(p[:, 0])


if __name__ == "__main__":
    # Small config consistent with the module: two id fields -> 2*embed_dim.
    input_dims = (10, 20)       # vocab sizes for x1 / x2
    embed_dim = 16              # -> embed_output_dim = 32
    num_cross_layers = 3
    mlp_dims = (64, 32)
    batch = 200                 # deliberately NOT a multiple of the 128 tile

    key = jax.random.PRNGKey(0)
    kp, k1, k2 = jax.random.split(key, 3)
    params = init_params(kp, input_dims, embed_dim, num_cross_layers, mlp_dims)
    x1 = jax.random.randint(k1, (batch,), 0, input_dims[0], dtype=jnp.int32)
    x2 = jax.random.randint(k2, (batch,), 0, input_dims[1], dtype=jnp.int32)

    out = dcn_forward_pallas(params, x1, x2, embed_dim, num_cross_layers,
                             mlp_dims)
    out = jax.block_until_ready(out)

    ref = dcn_forward_reference(params, x1, x2, embed_dim, num_cross_layers,
                                mlp_dims)
    assert out.shape == (batch,)
    # Tolerance loosened vs the f32 version because the kernel uses bf16
    # weights/one-hot on the MXU (f32 accumulation), as requested by the
    # performance review.
    assert jnp.allclose(out, ref, atol=2e-2, rtol=2e-2), (
        float(jnp.max(jnp.abs(out - ref))))
    print("KERNEL_OK")
</pallas_src>

<mosaic_0001>
module attributes {stable_mosaic.version = 11 : i64} {
  func.func @_dcn_kernel(%arg0: i32, %arg1: memref<2x128xi32, #tpu.memory_space<vmem>>, %arg2: memref<32x128xbf16, #tpu.memory_space<vmem>>, %arg3: memref<144x128xbf16, #tpu.memory_space<vmem>>, %arg4: memref<64x128xf32, #tpu.memory_space<vmem>>, %arg5: memref<1x128xf32, #tpu.memory_space<vmem>>) attributes {dimension_semantics = [#tpu.dimension_semantics<parallel>], iteration_bounds = array<i64: 2>, scalar_prefetch = 0 : i64, scratch_operands = 0 : i64, tpu.core_type = #tpu.core_type<tc>, window_params = [{transform_indices = @transform_0, window_bounds = array<i64: 2, 128>}, {pipeline_mode = #tpu.pipeline_mode<synchronous>, transform_indices = @transform_1, window_bounds = array<i64: 32, 128>}, {pipeline_mode = #tpu.pipeline_mode<synchronous>, transform_indices = @transform_2, window_bounds = array<i64: 144, 128>}, {pipeline_mode = #tpu.pipeline_mode<synchronous>, transform_indices = @transform_3, window_bounds = array<i64: 64, 128>}, {transform_indices = @transform_4, window_bounds = array<i64: 1, 128>}]} {
    %0 = tpu.iota {dimensions = array<i32: 0>} : vector<128x128xi32>
    %c0 = arith.constant 0 : index
    %c0_0 = arith.constant 0 : index
    %1 = vector.load %arg1[%c0, %c0_0] : memref<2x128xi32, #tpu.memory_space<vmem>>, vector<1x128xi32>
    %c1 = arith.constant 1 : index
    %c0_1 = arith.constant 0 : index
    %2 = vector.load %arg1[%c1, %c0_1] : memref<2x128xi32, #tpu.memory_space<vmem>>, vector<1x128xi32>
    %c10_i32 = arith.constant 10 : i32
    %3 = vector.broadcast %c10_i32 : i32 to vector<1x128xi32>
    %4 = arith.addi %2, %3 : vector<1x128xi32>
    %5 = vector.broadcast %1 : vector<1x128xi32> to vector<128x128xi32>
    %6 = arith.cmpi eq, %0, %5 : vector<128x128xi32>
    %7 = vector.broadcast %4 : vector<1x128xi32> to vector<128x128xi32>
    %8 = arith.cmpi eq, %0, %7 : vector<128x128xi32>
    %9 = arith.ori %6, %8 : vector<128x128xi1>
    %10 = arith.extui %9 : vector<128x128xi1> to vector<128x128xi32>
    %11 = arith.sitofp %10 : vector<128x128xi32> to vector<128x128xf32>
    %12 = arith.truncf %11 : vector<128x128xf32> to vector<128x128xbf16>
    %c0_2 = arith.constant 0 : index
    %c0_3 = arith.constant 0 : index
    %13 = vector.load %arg2[%c0_2, %c0_3] : memref<32x128xbf16, #tpu.memory_space<vmem>>, vector<32x128xbf16>
    %cst = arith.constant dense<0.000000e+00> : vector<32x128xf32>
    %14 = tpu.matmul %13, %12, %cst {dimension_numbers = #tpu.dot_dimension_numbers<[1], [0], [0], [1], [0, 0, 1, 1], [], []>} : vector<32x128xbf16>, vector<128x128xbf16>, vector<32x128xf32> -> vector<32x128xf32>
    %c0_4 = arith.constant 0 : index
    %c0_5 = arith.constant 0 : index
    %15 = vector.load %arg3[%c0_4, %c0_5] : memref<144x128xbf16, #tpu.memory_space<vmem>>, vector<1x32xbf16>
    %c0_6 = arith.constant 0 : index
    %c0_7 = arith.constant 0 : index
    %16 = vector.load %arg4[%c0_6, %c0_7] : memref<64x128xf32, #tpu.memory_space<vmem>>, vector<32x1xf32>
    %17 = arith.truncf %14 : vector<32x128xf32> to vector<32x128xbf16>
    %cst_8 = arith.constant dense<0.000000e+00> : vector<1x128xf32>
    %18 = tpu.matmul %15, %17, %cst_8 {dimension_numbers = #tpu.dot_dimension_numbers<[1], [0], [0], [1], [0, 0, 1, 1], [], []>} : vector<1x32xbf16>, vector<32x128xbf16>, vector<1x128xf32> -> vector<1x128xf32>
    %19 = vector.broadcast %18 : vector<1x128xf32> to vector<32x128xf32>
    %20 = arith.mulf %14, %19 : vector<32x128xf32>
    %21 = vector.broadcast %16 : vector<32x1xf32> to vector<32x128xf32>
    %22 = arith.addf %20, %21 : vector<32x128xf32>
    %23 = arith.addf %22, %14 : vector<32x128xf32>
    %c1_9 = arith.constant 1 : index
    %c0_10 = arith.constant 0 : index
    %24 = vector.load %arg3[%c1_9, %c0_10] : memref<144x128xbf16, #tpu.memory_space<vmem>>, vector<1x32xbf16>
    %c0_11 = arith.constant 0 : index
    %c1_12 = arith.constant 1 : index
    %25 = vector.load %arg4[%c0_11, %c1_12] : memref<64x128xf32, #tpu.memory_space<vmem>>, vector<32x1xf32>
    %26 = arith.truncf %23 : vector<32x128xf32> to vector<32x128xbf16>
    %cst_13 = arith.constant dense<0.000000e+00> : vector<1x128xf32>
    %27 = tpu.matmul %24, %26, %cst_13 {dimension_numbers = #tpu.dot_dimension_numbers<[1], [0], [0], [1], [0, 0, 1, 1], [], []>} : vector<1x32xbf16>, vector<32x128xbf16>, vector<1x128xf32> -> vector<1x128xf32>
    %28 = vector.broadcast %27 : vector<1x128xf32> to vector<32x128xf32>
    %29 = arith.mulf %14, %28 : vector<32x128xf32>
    %30 = vector.broadcast %25 : vector<32x1xf32> to vector<32x128xf32>
    %31 = arith.addf %29, %30 : vector<32x128xf32>
    %32 = arith.addf %31, %23 : vector<32x128xf32>
    %c2 = arith.constant 2 : index
    %c0_14 = arith.constant 0 : index
    %33 = vector.load %arg3[%c2, %c0_14] : memref<144x128xbf16, #tpu.memory_space<vmem>>, vector<1x32xbf16>
    %c0_15 = arith.constant 0 : index
    %c2_16 = arith.constant 2 : index
    %34 = vector.load %arg4[%c0_15, %c2_16] : memref<64x128xf32, #tpu.memory_space<vmem>>, vector<32x1xf32>
    %35 = arith.truncf %32 : vector<32x128xf32> to vector<32x128xbf16>
    %cst_17 = arith.constant dense<0.000000e+00> : vector<1x128xf32>
    %36 = tpu.matmul %33, %35, %cst_17 {dimension_numbers = #tpu.dot_dimension_numbers<[1], [0], [0], [1], [0, 0, 1, 1], [], []>} : vector<1x32xbf16>, vector<32x128xbf16>, vector<1x128xf32> -> vector<1x128xf32>
    %37 = vector.broadcast %36 : vector<1x128xf32> to vector<32x128xf32>
    %38 = arith.mulf %14, %37 : vector<32x128xf32>
    %39 = vector.broadcast %34 : vector<32x1xf32> to vector<32x128xf32>
    %40 = arith.addf %38, %39 : vector<32x128xf32>
    %41 = arith.addf %40, %32 : vector<32x128xf32>
    %c16 = arith.constant 16 : index
    %c0_18 = arith.constant 0 : index
    %42 = vector.load %arg3[%c16, %c0_18] : memref<144x128xbf16, #tpu.memory_space<vmem>>, vector<64x32xbf16>
    %c0_19 = arith.constant 0 : index
    %c3 = arith.constant 3 : index
    %43 = vector.load %arg4[%c0_19, %c3] : memref<64x128xf32, #tpu.memory_space<vmem>>, vector<64x1xf32>
    %44 = arith.truncf %14 : vector<32x128xf32> to vector<32x128xbf16>
    %cst_20 = arith.constant dense<0.000000e+00> : vector<64x128xf32>
    %45 = tpu.matmul %42, %44, %cst_20 {dimension_numbers = #tpu.dot_dimension_numbers<[1], [0], [0], [1], [0, 0, 1, 1], [], []>} : vector<64x32xbf16>, vector<32x128xbf16>, vector<64x128xf32> -> vector<64x128xf32>
    %46 = vector.broadcast %43 : vector<64x1xf32> to vector<64x128xf32>
    %47 = arith.addf %45, %46 : vector<64x128xf32>
    %cst_21 = arith.constant 0.000000e+00 : f32
    %48 = vector.broadcast %cst_21 : f32 to vector<64x128xf32>
    %49 = arith.maximumf %47, %48 : vector<64x128xf32>
    %c80 = arith.constant 80 : index
    %c0_22 = arith.constant 0 : index
    %50 = vector.load %arg3[%c80, %c0_22] : memref<144x128xbf16, #tpu.memory_space<vmem>>, vector<32x64xbf16>
    %c0_23 = arith.constant 0 : index
    %c4 = arith.constant 4 : index
    %51 = vector.load %arg4[%c0_23, %c4] : memref<64x128xf32, #tpu.memory_space<vmem>>, vector<32x1xf32>
    %52 = arith.truncf %49 : vector<64x128xf32> to vector<64x128xbf16>
    %cst_24 = arith.constant dense<0.000000e+00> : vector<32x128xf32>
    %53 = tpu.matmul %50, %52, %cst_24 {dimension_numbers = #tpu.dot_dimension_numbers<[1], [0], [0], [1], [0, 0, 1, 1], [], []>} : vector<32x64xbf16>, vector<64x128xbf16>, vector<32x128xf32> -> vector<32x128xf32>
    %54 = vector.broadcast %51 : vector<32x1xf32> to vector<32x128xf32>
    %55 = arith.addf %53, %54 : vector<32x128xf32>
    %cst_25 = arith.constant 0.000000e+00 : f32
    %56 = vector.broadcast %cst_25 : f32 to vector<32x128xf32>
    %57 = arith.maximumf %55, %56 : vector<32x128xf32>
    %c112 = arith.constant 112 : index
    %c0_26 = arith.constant 0 : index
    %58 = vector.load %arg3[%c112, %c0_26] : memref<144x128xbf16, #tpu.memory_space<vmem>>, vector<1x32xbf16>
    %c128 = arith.constant 128 : index
    %c0_27 = arith.constant 0 : index
    %59 = vector.load %arg3[%c128, %c0_27] : memref<144x128xbf16, #tpu.memory_space<vmem>>, vector<1x32xbf16>
    %c0_28 = arith.constant 0 : index
    %c5 = arith.constant 5 : index
    %60 = vector.load %arg4[%c0_28, %c5] : memref<64x128xf32, #tpu.memory_space<vmem>>, vector<1x1xf32>
    %61 = arith.truncf %41 : vector<32x128xf32> to vector<32x128xbf16>
    %cst_29 = arith.constant dense<0.000000e+00> : vector<1x128xf32>
    %62 = tpu.matmul %58, %61, %cst_29 {dimension_numbers = #tpu.dot_dimension_numbers<[1], [0], [0], [1], [0, 0, 1, 1], [], []>} : vector<1x32xbf16>, vector<32x128xbf16>, vector<1x128xf32> -> vector<1x128xf32>
    %63 = arith.truncf %57 : vector<32x128xf32> to vector<32x128xbf16>
    %cst_30 = arith.constant dense<0.000000e+00> : vector<1x128xf32>
    %64 = tpu.matmul %59, %63, %cst_30 {dimension_numbers = #tpu.dot_dimension_numbers<[1], [0], [0], [1], [0, 0, 1, 1], [], []>} : vector<1x32xbf16>, vector<32x128xbf16>, vector<1x128xf32> -> vector<1x128xf32>
    %65 = arith.addf %62, %64 : vector<1x128xf32>
    %66 = vector.broadcast %60 : vector<1x1xf32> to vector<1x128xf32>
    %67 = arith.addf %65, %66 : vector<1x128xf32>
    %68 = arith.negf %67 : vector<1x128xf32>
    %69 = math.exp %68 : vector<1x128xf32>
    %cst_31 = arith.constant 1.000000e+00 : f32
    %70 = vector.broadcast %cst_31 : f32 to vector<1x128xf32>
    %71 = arith.addf %70, %69 : vector<1x128xf32>
    %72 = arith.divf %70, %71 : vector<1x128xf32>
    %c0_32 = arith.constant 0 : index
    %c0_33 = arith.constant 0 : index
    %73 = vector.load %arg5[%c0_32, %c0_33] : memref<1x128xf32, #tpu.memory_space<vmem>>, vector<1x128xf32>
    tpu.vector_store %arg5[%c0_32, %c0_33], %72 {strides = array<i32>} : memref<1x128xf32, #tpu.memory_space<vmem>>, vector<1x128xf32>,
    return
  }
  func.func @transform_0(%arg0: i32) -> (i32, i32) {
    %c0_i32 = arith.constant 0 : i32
    %c0_i32_0 = arith.constant 0 : i32
    return %c0_i32, %arg0 : i32, i32
  }
  func.func @transform_1(%arg0: i32) -> (i32, i32) {
    %c0_i32 = arith.constant 0 : i32
    %c0_i32_0 = arith.constant 0 : i32
    %c0_i32_1 = arith.constant 0 : i32
    return %c0_i32, %c0_i32_0 : i32, i32
  }
  func.func @transform_2(%arg0: i32) -> (i32, i32) {
    %c0_i32 = arith.constant 0 : i32
    %c0_i32_0 = arith.constant 0 : i32
    %c0_i32_1 = arith.constant 0 : i32
    return %c0_i32, %c0_i32_0 : i32, i32
  }
  func.func @transform_3(%arg0: i32) -> (i32, i32) {
    %c0_i32 = arith.constant 0 : i32
    %c0_i32_0 = arith.constant 0 : i32
    %c0_i32_1 = arith.constant 0 : i32
    return %c0_i32, %c0_i32_0 : i32, i32
  }
  func.func @transform_4(%arg0: i32) -> (i32, i32) {
    %c0_i32 = arith.constant 0 : i32
    %c0_i32_0 = arith.constant 0 : i32
    return %c0_i32, %arg0 : i32, i32
  }
}

</mosaic_0001>

<bundles_post_ra>
// kernel: tpu_custom_call.1
= control target key start
LH: loop header
LB: loop body
LE: loop exit
PB: predicated region body
PF: predicated region fallthrough
CT: control target
= control target key end

     0   :  { %9 = vsyncpa [#allocation3], 0  ;;  %s2130_s0 = inlined_call_operand.hbm [shape: s32[2,256], index: 0, kind: input, shape index: {}]   ;;  %s2131_s1 = inlined_call_operand.hbm [shape: bf16[32,128], index: 1, kind: input, shape index: {}]   ;;  %s2132_s2 = inlined_call_operand.hbm [shape: bf16[144,128], index: 2, kind: input, shape index: {}]   ;;  %s2133_s3 = inlined_call_operand.hbm [shape: f32[64,128], index: 3, kind: input, shape index: {}]   ;;  %s2134_s4 = inlined_call_operand.hbm [shape: f32[1,256], index: 4, kind: output, shape index: {}]  }
   0x1   :  { %11 = vsyncpa [#allocation3 + $0x1], 0 }
   0x2   :  { %12 = vsyncpa [#allocation6], 0 }
   0x3   :  { %13 = vsyncpa [#allocation9], 0 }
   0x4   :  { %14 = vsyncpa [#allocation4], 0 }
   0x5   :  { %16 = vsyncpa [#allocation4 + $0x1], 0  ;;  %s1691_s15 = smov 0   ;;  %s1693_s16 = smov 0  }
   0x6   :  { %s1695_s17 = smov 0   ;;  %s1697_s18 = smov 0  }
   0x7 LB: > { %s1712_s19 = sadd.s32 4294967295, %s1646_s18   ;;  %s1159_s20 = sadd.s32 4294967294, %s1646_s18   ;;  %s1646_s18 = sphi %s1697_s18, %s2178_s18   ;;  %s1642_s17 = sphi %s1695_s17, %s2177_s17   ;;  %s1638_s16 = sphi %s1693_s16, %s2176_s16   ;;  %s1634_s15 = sphi %s1691_s15, %s2175_s15  }
   0x8   : > { %p42_p0 = scmp.ne.s32.totalorder %s1638_s16, %s1634_s15  ;;  %p2135_p1 = scmp.eq.s32.totalorder %s1712_s19, 0 }
   0x9   : > { %p135_p3 = scmp.eq.s32.totalorder %s1159_s20, 1  ;;  %p1160_p5 = scmp.ge.s32.totalorder %s1646_s18, 1 }
   0xa   : > { %p1721_p4 = por %p2135_p1, %p42_p0  ;;  %p142_p7 = scmp.lt.s32.totalorder %s1646_s18, 3 }
   0xb   : > { %p1726_p6 = por %p135_p3, %p42_p0  ;;  %s1648_s24 = smov [#allocation5]  }
   0xc   : > { %s2139_s21 = scalar_select %p1721_p4, 1, 0 }
   0xd   : > { %s2140_s22 = scalar_select %p1726_p6, 1, 0 }
   0xe   : > { %p1731_p8 = pnand %p1160_p5, %p142_p7  ;;  %s154_s25 = sshll.u32 %s1648_s24, 4  ;;  %s155_s25 = int_to_ptr.vmem [resolvable:$true] %s154_s25 }
   0xf   : > { %s1649_s27 = smov [#allocation7]   ;;  %s1650_s29 = smov [#allocation8]  }
  0x10   : > { %s2141_s23 = scalar_select %p1731_p8, 1, 0 }
  0x11   : > { %p1367_p9 = pneg %p1731_p8  ;;  %s167_s28 = sshll.u32 %s1649_s27, 4  ;;  %s168_s28 = int_to_ptr.vmem [resolvable:$true] %s167_s28 }
  0x12   : > { %s180_s30 = sshll.u32 %s1650_s29, 4  ;;  %s1479_s5 = scalar_lea.vmem %s155_s25, 256  ;;  %s181_s30 = int_to_ptr.vmem [resolvable:$true] %s180_s30 }
  0x13   : > { %p1740_p11 = pnand %p1367_p9, %p2135_p1  ;;  %p1480_p13 = scmp.ne.s32.totalorder %s155_s25, %s1479_s5 }
  0x14   : > { %p1487_p5 = scmp.lt.s32.totalorder %s155_s25, %s155_s25  ;;  %p1488_p7 = scmp.lt.s32.totalorder %s1479_s5, %s1479_s5 }
  0x15   : > { %p1470_p12 = pneg %p1740_p11 }
  0x16   : > { %p1489_p9 = por %p1488_p7, %p1487_p5 }
  0x17   : > { %p1482_p0 = pnand %p1480_p13, %p1470_p12 }
  0x19   : > { %p1483_p3 = pneg %p1482_p0 }
  0x1b   : > { %p1490_p10 = pnand %p1489_p9, %p1483_p3 }
  0x1d   : > { %1493 = shalt.err (!%p1490_p10)
}
  0x1e   : > { %s1651_s6 = smov 64   ;;  %s1652_s7 = smov 4  }
  0x1f   : > { %1370 = dma.hbm_to_vmem [thread:$0]  (!%p1740_p11), %s2131_s1, 256, %s155_s25, [#allocation6], %s1651_s6, %s1651_s6, %s1652_s7  }
  0x20   : > { %s1505_s10 = scalar_lea.vmem %s168_s28, 1152  ;;  %p1513_p2 = scmp.lt.s32.totalorder %s168_s28, %s168_s28 }
  0x21   : > { %p1506_p1 = scmp.ne.s32.totalorder %s168_s28, %s1505_s10  ;;  %p1514_p6 = scmp.lt.s32.totalorder %s1505_s10, %s1505_s10 }
  0x23   : > { %p1508_p13 = pnand %p1506_p1, %p1470_p12  ;;  %p1515_p5 = por %p1514_p6, %p1513_p2 }
  0x25   : > { %p1509_p0 = pneg %p1508_p13 }
  0x27   : > { %p1516_p3 = pnand %p1515_p5, %p1509_p0 }
  0x29   : > { %1519 = shalt.err (!%p1516_p3)
}
  0x2a   : > { %1373 = dma.hbm_to_vmem [thread:$0]  (!%p1740_p11), %s2132_s2, 1152, %s168_s28, [#allocation6], %s1651_s6, %s1651_s6, %s1652_s7  }
  0x2b   : > { %s1531_s13 = scalar_lea.vmem %s181_s30, 1024  ;;  %p1539_p9 = scmp.lt.s32.totalorder %s181_s30, %s181_s30 }
  0x2c   : > { %p1532_p10 = scmp.ne.s32.totalorder %s181_s30, %s1531_s13  ;;  %p1540_p13 = scmp.lt.s32.totalorder %s1531_s13, %s1531_s13 }
  0x2e   : > { %p1534_p7 = pnand %p1532_p10, %p1470_p12  ;;  %p1541_p4 = por %p1540_p13, %p1539_p9 }
  0x30   : > { %p1535_p1 = pneg %p1534_p7 }
  0x32   : > { %p1542_p2 = pnand %p1541_p4, %p1535_p1 }
  0x34   : > { %1545 = shalt.err (!%p1542_p2)
}
  0x35   : > { %s1653_s14 = smov 128   ;;  %s1654_s20 = smov 8  }
  0x36   : > { %1376 = dma.hbm_to_vmem [thread:$0]  (!%p1740_p11), %s2133_s3, 1024, %s181_s30, [#allocation9], %s1653_s14, %s1653_s14, %s1654_s20  }
  0x37   : > { %s1771_s27 = sadd.s32 1, %s1646_s18   ;;  %s29_s29 = sadd.s32 1, %s1642_s17 }
  0x38   : > { %s26_s28 = ssub.s32 %s1646_s18, %s1771_s27  ;;  %p36_p6 = scmp.ne.s32.totalorder %s1642_s17, %s1638_s16 }
  0x39   : > { %p27_p4 = scmp.eq.s32.totalorder %s26_s28, 0  ;;  %p37_p12 = scmp.eq.s32.totalorder %s1646_s18, 0 }
  0x3a   : > { %p1388_p0 = scmp.lt.s32.totalorder %s1646_s18, 2  ;;  %p2143_p3 = scmp.eq.s32.totalorder %s1712_s19, 1 }
  0x3b   : > { %s1781_s5 = scalar_select %p27_p4, %s1642_s17, %s29_s29  }
  0x3c   : > { %p38_p5 = por %p37_p12, %p36_p6  ;;  %p1785_p10 = por %p2143_p3, %p36_p6 }
  0x3d   : > { %s194_s26 = sand.u32 1, %s1642_s17   ;;  %s1166_s7 = sshll.u32 %s1646_s18, 5 }
  0x3e   : > { %s2144_s6 = scalar_select %p1785_p10, 1, 0 }
  0x3f   : > { %s1165_s30 = sshll.u32 %s194_s26, 1  ;;  %s1794_s10 = scalar_lea.hbm %s2130_s0, %s1166_s7 }
  0x40   : > { %s198_s11 = scalar_lea.vmem [#allocation2], %s1165_s30  ;;  %p1796_p11 = pnand %p1388_p0, %p38_p5 }
  0x41   : > { %s205_s12 = sshll.u32 %s198_s11, 4  ;;  %s195_s14 = scalar_lea.sflag [#allocation3], %s194_s26  ;;  %s206_s12 = int_to_ptr.vmem [resolvable:$true] %s205_s12 }
  0x42   : > { %s1546_s20 = scalar_lea.hbm %s1794_s10, 32  ;;  %p1548_p1 = pneg %p1796_p11 }
  0x43   : > { %p1547_p7 = scmp.ne.s32.totalorder %s1794_s10, %s1546_s20  ;;  %s1551_s28 = scalar_lea.hbm %s2130_s0, 64 }
  0x44   : > { %p1552_p2 = scmp.lt.s32.totalorder %s1794_s10, %s2130_s0  ;;  %p1553_p4 = scmp.lt.s32.totalorder %s1551_s28, %s1546_s20 }
  0x45   : > { %p1549_p9 = pnand %p1548_p1, %p1547_p7 }
  0x46   : > { %p1554_p6 = por %p1553_p4, %p1552_p2 }
  0x47   : > { %p1550_p13 = pneg %p1549_p9 }
  0x49   : > { %p1555_p12 = pnand %p1554_p6, %p1550_p13 }
  0x4b   : > { %1558 = shalt.err (!%p1555_p12)
}
  0x4c   : > { %s1559_s30 = scalar_lea.vmem %s206_s12, 32  ;;  %s1655_s26 = smov [#allocation2]  }
  0x4d   : > { %p1560_p0 = scmp.ne.s32.totalorder %s206_s12, %s1559_s30  ;;  %s1564_s8 = sshll.u32 %s1655_s26, 4  ;;  %s1565_s8 = int_to_ptr.vmem [resolvable:$false] %s1564_s8 }
  0x4e   : > { %s1566_s9 = scalar_lea.vmem %s1565_s8, 64  ;;  %p1567_p7 = scmp.lt.s32.totalorder %s206_s12, %s1565_s8 }
  0x4f   : > { %p1562_p5 = pnand %p1560_p0, %p1548_p1  ;;  %p1568_p9 = scmp.lt.s32.totalorder %s1566_s9, %s1559_s30 }
  0x51   : > { %p1563_p3 = pneg %p1562_p5  ;;  %p1569_p10 = por %p1568_p9, %p1567_p7 }
  0x53   : > { %p1570_p8 = pnand %p1569_p10, %p1563_p3 }
  0x55   : > { %1573 = shalt.err (!%p1570_p8)
}
  0x56   : > { %1380 = dma.hbm_to_vmem [thread:$0]  (!%p1796_p11), %s1794_s10, 32, %s206_s12, %s195_s14  }
  0x57   : > { %p2146_p13 = scmp.ne.s32.totalorder %s2141_s23, 0 }
  0x58   : > { %s1817_s11 = sand.u32 (!%p2146_p13), 1, %s1638_s16   ;;  %p2147_p1 = scmp.ne.s32.totalorder (!%p2146_p13), %s2139_s21, 0 }
  0x59   : > { %214 = sbr.rel (%p2146_p13) target bundleno = 1458 (0x5b2), region = 36  ;;  %s1168_s20 = sshll.u32 (!%p2146_p13), %s1817_s11, 1 }
  0x5a   : > { %s217_s24 = scalar_lea.sflag (!%p2146_p13), [#allocation3], %s1817_s11  ;;  %s220_s25 = scalar_lea.vmem (!%p2146_p13), [#allocation2], %s1168_s20 }
  0x5e   : > { %1617 = dma.done.wait (%p2147_p1), %s217_s24, 32  }
  0x5f   : > { %1619 = vsyncadd (%p2147_p1), %s217_s24, 4294967264  ;;  %p2148_p8 = scmp.eq.s32.totalorder %s1712_s19, 0 }
  0x61   : > { %1621 = dma.done.wait (%p2148_p8), [#allocation6], 1408   ;;  %p2149_p10 = pmov %p2148_p8 }
  0x62   : > { %p2150_p11 = pmov %p2148_p8 }
  0x63   : > { %1623 = vsyncadd (%p2149_p10), [#allocation6], 4294965888 }
  0x64   : > { %1625 = dma.done.wait (%p2150_p11), [#allocation9], 1024   ;;  %p2151_p2 = pmov %p2148_p8 }
  0x65   : > { %v257_v0 = vlaneseq  ;;  %v1840_v5 = vld [vmem:[%s220_s25] ss:$0 sm:$0xff]  ;;  %v275_v6 = vld [vmem:[%s220_s25 + $0x1] sm:$0x1]  ;;  %v1454_v8 = vld [vmem:[#allocation5] sm:$0xff]   ;;  %v1657_v35 = vmov 0.0  }
  0x66   : > { %1627 = vsyncadd (%p2151_p2), [#allocation9], 4294966272  ;;  %v276_v7 = vadd.s32 10, %v275_v6  ;;  %1283 = vmatprep.mubr.bf16.mxu0 %v1454_v8  ;;  %v1656_v16 = vmov 1.0|1.0   ;;  %v1455_v34 = vld [vmem:[#allocation5 + $0x8] sm:$0xff]   ;;  %1287 = vmatprep.subr.bf16.mxu1 %v1657_v35 }
  0x67   : > { %v1833_v1 = vshrl.u32 %v257_v0, 7  ;;  %v1971_v36 = vld [vmem:[#allocation8 + $0x10] sm:$0xff]  ;;  %v1973_v37 = vld [vmem:[#allocation8] sm:$0xff]  ;;  %v1659_v38 = vmov 0   ;;  %v1977_v39 = vld [vmem:[#allocation8 + $0x18] sm:$0xff]  ;;  %v1660_v48 = vmov 1  }
  0x68   : > { %1441 = vset.pattern.permute.xlu0 %v1659_v38  ;;  %1442 = vset.pattern.permute.xlu1 %v1659_v38  ;;  %v1979_v40 = vld [vmem:[#allocation8 + $0x8] sm:$0xff]  ;;  %v438_v47 = vld [vmem:[#allocation7] sm:$0x1]  ;;  %v1663_v17 = vmov 4   ;;  %s1227_s21 = sshll.u32 %s1712_s19, 4  ;;  %s255_s23 = scalar_lea.vmem [#allocation10], %s1817_s11 }
  0x69   : > { %v272_v2 = vadd.s32 112, %v1833_v1  ;;  %v1837_v3 = vsub.s32 0, %v1833_v1  ;;  %v273_v4 = vadd.s32 120, %v1833_v1  ;;  %v270_v9 = vadd.s32 96, %v1833_v1  ;;  %509 = vperm.xlu0 %1441, %v1971_v36   ;;  %499 = vperm.xlu1 %1442, %v1973_v37   ;;  %v705_v13 = vld [vmem:[#allocation8 + $0x38] sm:$0xff]  ;;  %s1064_s10 = sshll.u32 %s255_s23, 4  ;;  %s2093_s14 = scalar_lea.hbm %s2134_s4, %s1227_s21  ;;  %s1065_s10 = int_to_ptr.vmem [resolvable:$true] %s1064_s10 }
  0x6a   : > { %v271_v10 = vadd.s32 104, %v1833_v1  ;;  %v268_v12 = vadd.s32 80, %v1833_v1  ;;  %v269_v14 = vadd.s32 88, %v1833_v1  ;;  %v266_v15 = vadd.s32 64, %v1833_v1  ;;  %s1052_s28 = scalar_lea.sflag [#allocation4], %s1817_s11  ;;  %s1574_s29 = scalar_lea.vmem %s1065_s10, 16 }
  0x6b   : > { %vm295_vm0 = vcmp.eq.s32.totalorder %v272_v2, %v1840_v5  ;;  %v1846_v11 = vrot.slane %v276_v7, %v1837_v3  ;;  %vm296_vm1 = vcmp.eq.s32.totalorder %v273_v4, %v1840_v5  ;;  %vm293_vm5 = vcmp.eq.s32.totalorder %v270_v9, %v1840_v5  ;;  %p1575_p4 = scmp.ne.s32.totalorder %s1065_s10, %s1574_s29  ;;  %p2172_p6 = scmp.ne.s32.totalorder %s2144_s6, 0 }
  0x6c   : > { %vm294_vm8 = vcmp.eq.s32.totalorder %v271_v10, %v1840_v5  ;;  %vm291_vm12 = vcmp.eq.s32.totalorder %v268_v12, %v1840_v5  ;;  %v267_v18 = vadd.s32 72, %v1833_v1  ;;  %vm292_vm15 = vcmp.eq.s32.totalorder %v269_v14, %v1840_v5  ;;  %s1665_s7 = smov [#allocation10]  }
  0x6d   : > { %vm315_vm2 = vcmp.eq.s32.totalorder %v272_v2, %v1846_v11  ;;  %vm316_vm3 = vcmp.eq.s32.totalorder %v273_v4, %v1846_v11  ;;  %vm313_vm6 = vcmp.eq.s32.totalorder %v270_v9, %v1846_v11  ;;  %vm314_vm9 = vcmp.eq.s32.totalorder %v271_v10, %v1846_v11  ;;  %514 = vperm.xlu0 %1441, %v1977_v39   ;;  %p1576_p12 = pnand %p1575_p4, %p2172_p6  ;;  %s1578_s30 = sshll.u32 %s1665_s7, 4  ;;  %s1579_s30 = int_to_ptr.vmem [resolvable:$false] %s1578_s30 }
  0x6e   : > { %vm1852_vm4 = vmor %vm295_vm0, %vm315_vm2  ;;  %vm311_vm13 = vcmp.eq.s32.totalorder %v268_v12, %v1846_v11  ;;  %vm312_vm0 = vcmp.eq.s32.totalorder %v269_v14, %v1846_v11  ;;  %v264_v19 = vadd.s32 48, %v1833_v1  ;;  %v265_v21 = vadd.s32 56, %v1833_v1  ;;  %504 = vperm.xlu1 %1442, %v1979_v40   ;;  %v702_v14 = vld [vmem:[#allocation8 + $0x20] sm:$0xff]  ;;  %s1580_s19 = scalar_lea.vmem %s1579_s30, 32  ;;  %p1581_p5 = scmp.lt.s32.totalorder %s1065_s10, %s1579_s30 }
  0x6f   : > { %vm332_vm7 = vmor %vm296_vm1, %vm316_vm3  ;;  %vm289_vm3 = vcmp.eq.s32.totalorder %v266_v15, %v1840_v5  ;;  %v262_v23 = vadd.s32 32, %v1833_v1  ;;  %v263_v25 = vadd.s32 40, %v1833_v1  ;;  %v260_v27 = vadd.s32 16, %v1833_v1  ;;  %p1577_p0 = pneg %p1576_p12  ;;  %p1582_p3 = scmp.lt.s32.totalorder %s1580_s19, %s1574_s29 }
  0x70   : > { %vm1191_vm10 = vmpackc.low %vm332_vm7, %vm1852_vm4  ;;  %vm309_vm4 = vcmp.eq.s32.totalorder %v266_v15, %v1846_v11  ;;  %vm310_vm7 = vcmp.eq.s32.totalorder %v267_v18, %v1846_v11  ;;  %v261_v29 = vadd.s32 24, %v1833_v1  ;;  %v259_v33 = vadd.s32 8, %v1833_v1  ;;  %v703_v15 = vld [vmem:[#allocation8 + $0x28] sm:$0xff] }
  0x71   : > { %1267 = vmatprep.subr.msk.bf16.mxu0 %vm1191_vm10, %v1656_v16  ;;  %vm1865_vm11 = vmor %vm293_vm5, %vm313_vm6  ;;  %vm290_vm6 = vcmp.eq.s32.totalorder %v267_v18, %v1840_v5  ;;  %1443 = vset.pattern.permute.xlu0 %v1660_v48  ;;  %v1208_v8 = vcombine.low %v438_v47, %v438_v47  ;;  %v1661_v12 = vmov 3   ;;  %p1583_p7 = por %p1582_p3, %p1581_p5 }
  0x72   : > { %1268 = vmatpush3.bf16.msk.msra.mxu0 %vm1191_vm10, %v1656_v16  ;;  %vm330_vm14 = vmor %vm294_vm8, %vm314_vm9  ;;  %vm287_vm10 = vcmp.eq.s32.totalorder %v264_v19, %v1840_v5  ;;  %1444 = vset.pattern.permute.xlu1 %v1660_v48 }
  0x73   : > { %vm1193_vm1 = vmpackc.low %vm330_vm14, %vm1865_vm11  ;;  %vm307_vm11 = vcmp.eq.s32.totalorder %v264_v19, %v1846_v11  ;;  %vm308_vm14 = vcmp.eq.s32.totalorder %v265_v21, %v1846_v11  ;;  %593 = vperm.xlu0 %1443, %v1971_v36   ;;  %597 = vperm.xlu1 %1444, %v1977_v39   ;;  %v531_v10 = vshrl.u32 %v1208_v8, 16  ;;  %p1584_p9 = pnand %p1583_p7, %p1577_p0 }
  0x74   : > { %1269 = vmatprep.subr.msk.bf16.mxu0 %vm1193_vm1, %v1656_v16  ;;  %vm1879_vm2 = vmor %vm291_vm12, %vm311_vm13  ;;  %vm288_vm13 = vcmp.eq.s32.totalorder %v265_v21, %v1840_v5 }
  0x75   : > { %vm1886_vm5 = vmor %vm292_vm15, %vm312_vm0 }
  0x76   : > { %1270 = vmatpush3.bf16.msk.msra.mxu0 %vm1193_vm1, %v1656_v16  ;;  %vm1195_vm8 = vmpackc.low %vm1886_vm5, %vm1879_vm2  ;;  %vm285_vm1 = vcmp.eq.s32.totalorder %v262_v23, %v1840_v5  ;;  %vm305_vm2 = vcmp.eq.s32.totalorder %v262_v23, %v1846_v11  ;;  %vm306_vm5 = vcmp.eq.s32.totalorder %v263_v25, %v1846_v11 }
  0x77   : > { %1271 = vmatprep.subr.msk.bf16.mxu0 %vm1195_vm8, %v1656_v16  ;;  %vm1899_vm9 = vmor %vm289_vm3, %vm309_vm4  ;;  %vm286_vm4 = vcmp.eq.s32.totalorder %v263_v25, %v1840_v5  ;;  %589 = vperm.xlu0 %1443, %v1979_v40  }
  0x78   : > { %vm1906_vm12 = vmor %vm290_vm6, %vm310_vm7  ;;  %585 = vperm.xlu1 %1444, %v1973_v37  }
  0x79   : > { %vm1197_vm15 = vmpackc.low %vm1906_vm12, %vm1899_vm9  ;;  %vm303_vm9 = vcmp.eq.s32.totalorder %v260_v27, %v1846_v11  ;;  %vm304_vm12 = vcmp.eq.s32.totalorder %v261_v29, %v1846_v11 }
  0x7a   : > { %1272 = vmatpush3.bf16.msk.msra.mxu0 %vm1195_vm8, %v1656_v16  ;;  %vm1918_vm0 = vmor %vm287_vm10, %vm307_vm11  ;;  %vm283_vm8 = vcmp.eq.s32.totalorder %v260_v27, %v1840_v5  ;;  %vm284_vm11 = vcmp.eq.s32.totalorder %v261_v29, %v1840_v5 }
  0x7b   : > { %1273 = vmatprep.subr.msk.bf16.mxu0 %vm1197_vm15, %v1656_v16  ;;  %vm1926_vm3 = vmor %vm288_vm13, %vm308_vm14  ;;  %1446 = vset.pattern.permute.xlu0 %v1661_v12 }
  0x7c   : > { %vm1199_vm6 = vmpackc.low %vm1926_vm3, %vm1918_vm0  ;;  %vm302_vm3 = vcmp.eq.s32.totalorder %v259_v33, %v1846_v11  ;;  %1445 = vset.pattern.permute.xlu1 %v1661_v12  ;;  %743 = vperm.xlu0 %1446, %v705_v13  }
  0x7d   : > { %vm1936_vm7 = vmor %vm285_vm1, %vm305_vm2  ;;  %vm301_vm1 = vcmp.eq.s32.totalorder %v1833_v1, %v1846_v11  ;;  %vm282_vm2 = vcmp.eq.s32.totalorder %v259_v33, %v1840_v5  ;;  %v704_v11 = vld [vmem:[#allocation8 + $0x30] sm:$0xff] }
  0x7e   : > { %1274 = vmatpush3.bf16.msk.msra.mxu0 %vm1197_vm15, %v1656_v16  ;;  %vm1943_vm10 = vmor %vm286_vm4, %vm306_vm5  ;;  %vm281_vm15 = vcmp.eq.s32.totalorder %v1833_v1, %v1840_v5  ;;  %738 = vperm.xlu1 %1445, %v704_v11  }
  0x7f   : > { %1275 = vmatprep.subr.msk.bf16.mxu0 %vm1199_vm6, %v1656_v16  ;;  %vm1201_vm13 = vmpackc.low %vm1943_vm10, %vm1936_vm7  ;;  %vm885_vm10 = vcmask 523264  }
  0x80   : > { %vm319_vm14 = vmor %vm283_vm8, %vm303_vm9  ;;  %vm445_vm9 = vcmask 261120   ;;  %718 = vperm.xlu0 %1446, %v1971_v36  }
  0x81   : > { %vm320_vm0 = vmor %vm284_vm11, %vm304_vm12 }
  0x82   : > { %1276 = vmatpush3.bf16.msk.msra.mxu0 %vm1199_vm6, %v1656_v16  ;;  %vm1203_vm4 = vmpackc.low %vm320_vm0, %vm319_vm14  ;;  %vm1658_vm6 = vmmov 0   ;;  %728 = vperm.xlu1 %1445, %v702_v14  }
  0x83   : > { %1277 = vmatprep.subr.msk.bf16.mxu0 %vm1201_vm13, %v1656_v16  ;;  %vm317_vm5 = vmor %vm281_vm15, %vm301_vm1  ;;  %1291 = vmatprep.mubr.msk.bf16.mxu1 %vm1658_vm6, %v1657_v35 }
  0x84   : > { %vm318_vm7 = vmor %vm282_vm2, %vm302_vm3  ;;  %708 = vperm.xlu0 %1446, %v1973_v37  }
  0x85   : > { %vm1205_vm8 = vmpackc.low %vm318_vm7, %vm317_vm5 }
  0x86   : > { %1278 = vmatpush3.bf16.msk.msra.mxu0 %vm1201_vm13, %v1656_v16  ;;  %733 = vperm.xlu1 %1445, %v703_v15  }
  0x87   : > { %1279 = vmatprep.subr.msk.bf16.mxu0 %vm1203_vm4, %v1656_v16 }
  0x8a   : > { %1280 = vmatpush3.bf16.msk.msra.mxu0 %vm1203_vm4, %v1656_v16  ;;  %723 = vperm.xlu1 %1445, %v1977_v39  }
  0x8b   : > { %1281 = vmatprep.subr.msk.bf16.mxu0 %vm1205_vm8, %v1656_v16 }
  0x8e   : > { %1282 = vmatpush3.bf16.msk.msra.mxu0 %vm1205_vm8, %v1656_v16  ;;  %v1662_v16 = vmov 2   ;;  %713 = vperm.xlu1 %1445, %v1979_v40  }
  0x8f   : > { %1447 = vset.pattern.permute.xlu0 %v1662_v16 }
  0x90   : > { %675 = vperm.xlu0 %1447, %v1971_v36  }
  0x91   : > { %1284 = vmatmul.mubr.bf16.vlgmr.msra.gmra.mxu0 %v1455_v34 }
  0x92   : > { %1448 = vset.pattern.permute.xlu1 %v1662_v16 }
  0x93   : > { %679 = vperm.xlu1 %1448, %v1977_v39  }
  0x94   : > { %1450 = vset.pattern.permute.xlu0 %v1663_v17 }
  0x95   : > { %872 = vperm.xlu0 %1450, %v1977_v39  }
  0x97   : > { %1449 = vset.pattern.permute.xlu1 %v1663_v17 }
  0x98   : > { %868 = vperm.xlu1 %1449, %v1971_v36  }
  0x99   : > { %860 = vperm.xlu0 %1450, %v1973_v37  }
  0x9c   : > { %1451 = vset.pattern.permute.xlu1 %v1662_v16 }
  0x9d   : > { %667 = vperm.xlu1 %1451, %v1973_v37  }
  0xa1   : > { %671 = vperm.xlu1 %1451, %v1979_v40  }
  0xa5   : > { %1452 = vset.pattern.permute.xlu1 %v1663_v17 }
  0xa6   : > { %864 = vperm.xlu1 %1452, %v1979_v40  }
  0xe4   : > { %v500_v49 = vpop.permute.xlu1 %499  ;;  %v510_v50 = vpop.permute.xlu0 %509 }
  0xe8   : > { %v515_v59 = vpop.permute.xlu0 %514 }
  0xe9   : > { %v505_v54 = vpop.permute.xlu1 %504 }
  0xee   : > { %v594_v18 = vpop.permute.xlu0 %593  ;;  %v598_v19 = vpop.permute.xlu1 %597 }
  0xf2   : > { %v590_v22 = vpop.permute.xlu0 %589 }
  0xf3   : > { %v586_v24 = vpop.permute.xlu1 %585 }
 0x151   : > { %v1983_v41 = vpop.f32.mrf.mxu0 }
 0x153   : > { %v1985_v42 = vpop.f32.mrf.mxu0 }
 0x155   : > { %v1987_v43 = vpop.f32.mrf.mxu0 }
 0x156   : > { %v1991_v44 = vpack.c.bf16 %v1987_v43, %v1983_v41 }
 0x157   : > { %v1993_v45 = vpop.f32.mrf.mxu0 }
 0x158   : > { %1288 = vmatpush3.bf16.msra.mxu1 %v1991_v44  ;;  %v1999_v46 = vpack.c.bf16 %v1993_v45, %v1985_v42 }
 0x159   : > { %1289 = vmatprep.subr.bf16.mxu1 %v1657_v35 }
 0x15c   : > { %1290 = vmatpush3.bf16.msra.mxu1 %v1999_v46 }
 0x15d   : > { %1295 = vmatprep.subr.bf16.mxu1 %v1657_v35 }
 0x15f   : > { %1292 = vmatmul.mubr.msk.bf16.vlgmr.msra.gmra.mxu1 %vm445_vm9, %v438_v47  ;;  %v1457_v47 = vld [vmem:[#allocation7] ss:$0 sps:$4 sm:$0x22]  }
 0x160   : > { %1299 = vmatprep.mubr.msk.bf16.mxu1 %vm1658_vm6, %v1657_v35 }
 0x21f   : > { %v483_v51 = vpop.f32.mrf.mxu1 }
 0x220   : > { %v492_v52 = vrot.slane %v483_v51, %v1837_v3  ;;  %v1459_v51 = vld [vmem:[#allocation7 + $0x10] sm:$0xff]  }
 0x221   : > { %v1293_v53 = vpop.f32.mrf.mxu1 }
 0x222   : > { %v493_v55 = vmul.f32 %v492_v52, %v1985_v42  ;;  %v495_v56 = vmul.f32 %v1983_v41, %v492_v52  ;;  %v496_v57 = vmul.f32 %v1987_v43, %v492_v52  ;;  %v494_v58 = vmul.f32 %v492_v52, %v1993_v45  ;;  %v1460_v52 = vld [vmem:[#allocation7 + $0x18] sm:$0xff]   ;;  %v1461_v53 = vld [vmem:[#allocation7 + $0x20] sm:$0xff]  }
 0x223   : > { %v486_v60 = vpop.f32.mrf.mxu1 }
 0x224   : > { %v519_v61 = vadd.f32 %v510_v50, %v495_v56  ;;  %v520_v62 = vadd.f32 %v515_v59, %v496_v57  ;;  %v517_v63 = vadd.f32 %v500_v49, %v493_v55  ;;  %v518_v0 = vadd.f32 %v505_v54, %v494_v58  ;;  %v1458_v50 = vld [vmem:[#allocation7 + $0x8] sm:$0xff]   ;;  %v739_v54 = vpop.permute.xlu1 %738 }
 0x225   : > { %v1294_v1 = vpop.f32.mrf.mxu1  ;;  %v614_v49 = vrot.slane %v1457_v47, 1 }
 0x226   : > { %v523_v2 = vadd.f32 %v1983_v41, %v519_v61  ;;  %v524_v4 = vadd.f32 %v1987_v43, %v520_v62  ;;  %v2018_v5 = vadd.f32 %v517_v63, %v1985_v42  ;;  %v522_v6 = vadd.f32 %v518_v0, %v1993_v45  ;;  %v744_v1 = vpop.permute.xlu0 %743 }
 0x228   : > { %v526_v7 = vpack.c.bf16 %v524_v4, %v523_v2  ;;  %v525_v9 = vpack.c.bf16 %v522_v6, %v2018_v5  ;;  %v729_v55 = vpop.permute.xlu1 %728 }
 0x22a   : > { %1296 = vmatpush3.bf16.msra.mxu1 %v526_v7  ;;  %v719_v7 = vpop.permute.xlu0 %718 }
 0x22b   : > { %1297 = vmatprep.subr.bf16.mxu1 %v1657_v35 }
 0x22e   : > { %1298 = vmatpush3.bf16.msra.mxu1 %v525_v9 }
 0x22f   : > { %1303 = vmatprep.subr.bf16.mxu1 %v1657_v35 }
 0x231   : > { %1300 = vmatmul.mubr.msk.bf16.vlgmr.msra.gmra.mxu1 %vm445_vm9, %v531_v10 }
 0x232   : > { %1307 = vmatprep.mubr.msk.bf16.mxu1 %vm1658_vm6, %v1657_v35 }
 0x2f1   : > { %v570_v20 = vpop.f32.mrf.mxu1 }
 0x2f2   : > { %v579_v21 = vrot.slane %v570_v20, %v1837_v3 }
 0x2f3   : > { %v1301_v23 = vpop.f32.mrf.mxu1 }
 0x2f4   : > { %v582_v25 = vmul.f32 %v1983_v41, %v579_v21  ;;  %v583_v26 = vmul.f32 %v1987_v43, %v579_v21  ;;  %v581_v27 = vmul.f32 %v579_v21, %v1993_v45  ;;  %v580_v28 = vmul.f32 %v579_v21, %v1985_v42 }
 0x2f5   : > { %v573_v29 = vpop.f32.mrf.mxu1 }
 0x2f6   : > { %v602_v30 = vadd.f32 %v594_v18, %v582_v25  ;;  %v603_v31 = vadd.f32 %v598_v19, %v583_v26  ;;  %v601_v32 = vadd.f32 %v590_v22, %v581_v27  ;;  %v600_v33 = vadd.f32 %v586_v24, %v580_v28  ;;  %v709_v18 = vpop.permute.xlu0 %708 }
 0x2f7   : > { %v1302_v34 = vpop.f32.mrf.mxu1 }
 0x2f8   : > { %v2044_v36 = vadd.f32 %v602_v30, %v523_v2  ;;  %v2046_v37 = vadd.f32 %v603_v31, %v524_v4  ;;  %v2048_v38 = vadd.f32 %v601_v32, %v522_v6  ;;  %v2051_v39 = vadd.f32 %v600_v33, %v2018_v5 }
 0x2fa   : > { %v610_v40 = vpack.c.bf16 %v2046_v37, %v2044_v36  ;;  %v609_v48 = vpack.c.bf16 %v2048_v38, %v2051_v39  ;;  %v676_v32 = vpop.permute.xlu0 %675 }
 0x2fc   : > { %1304 = vmatpush3.bf16.msra.mxu1 %v610_v40 }
 0x2fd   : > { %1305 = vmatprep.subr.bf16.mxu1 %v1657_v35 }
 0x300   : > { %1306 = vmatpush3.bf16.msra.mxu1 %v609_v48 }
 0x301   : > { %1311 = vmatprep.subr.bf16.mxu1 %v1991_v44 }
 0x303   : > { %1308 = vmatmul.mubr.msk.bf16.vlgmr.msra.gmra.mxu1 %vm445_vm9, %v614_v49 }
 0x304   : > { %1312 = vmatpush3.bf16.msra.mxu1 %v1991_v44  ;;  %1315 = vmatprep.mubr.msk.bf16.mxu1 %vm445_vm9, %v1458_v50  ;;  %v1462_v44 = vld [vmem:[#allocation7 + $0x28] sm:$0xff]  }
 0x305   : > { %1313 = vmatprep.subr.bf16.mxu1 %v1999_v46  ;;  %1331 = vmatprep.mubr.msk.bf16.mxu0 %vm885_vm10, %v1462_v44  ;;  %v1463_v44 = vld [vmem:[#allocation7 + $0x30] sm:$0xff]  }
 0x308   : > { %1314 = vmatpush3.bf16.msra.mxu1 %v1999_v46  ;;  %v734_v46 = vpop.permute.xlu1 %733 }
 0x309   : > { %1335 = vmatprep.subr.bf16.mxu1 %v1657_v35 }
 0x30b   : > { %1316 = vmatmul.mubr.msk.bf16.vlgmr.msra.gmra.mxu1 %vm445_vm9, %v1459_v51 }
 0x30c   : > { %1319 = vmatprep.mubr.msk.bf16.mxu1 %vm445_vm9, %v1460_v52  ;;  %v724_v59 = vpop.permute.xlu1 %723 }
 0x310   : > { %v714_v63 = vpop.permute.xlu1 %713 }
 0x313   : > { %1320 = vmatmul.mubr.msk.bf16.gmra.mxu1 %vm445_vm9, %v1461_v53 }
 0x314   : > { %1339 = vmatprep.mubr.msk.bf16.mxu1 %vm1658_vm6, %v1657_v35  ;;  %v680_v5 = vpop.permute.xlu1 %679 }
 0x318   : > { %v869_v13 = vpop.permute.xlu1 %868 }
 0x31c   : > { %v668_v27 = vpop.permute.xlu1 %667 }
 0x320   : > { %v672_v50 = vpop.permute.xlu1 %671 }
 0x3c3   : > { %v652_v56 = vpop.f32.mrf.mxu1 }
 0x3c4   : > { %v661_v23 = vrot.slane %v652_v56, %v1837_v3 }
 0x3c5   : > { %v1309_v57 = vpop.f32.mrf.mxu1 }
 0x3c6   : > { %v665_v30 = vmul.f32 %v1987_v43, %v661_v23  ;;  %v664_v31 = vmul.f32 %v1983_v41, %v661_v23  ;;  %v662_v3 = vmul.f32 %v661_v23, %v1985_v42  ;;  %v663_v49 = vmul.f32 %v661_v23, %v1993_v45 }
 0x3c7   : > { %v655_v58 = vpop.f32.mrf.mxu1 }
 0x3c8   : > { %v684_v47 = vadd.f32 %v676_v32, %v664_v31  ;;  %v685_v48 = vadd.f32 %v680_v5, %v665_v30  ;;  %v682_v52 = vadd.f32 %v668_v27, %v662_v3  ;;  %v683_v53 = vadd.f32 %v672_v50, %v663_v49 }
 0x3c9   : > { %v1310_v60 = vpop.f32.mrf.mxu1 }
 0x3ca   : > { %v688_v43 = vadd.f32 %v684_v47, %v2044_v36  ;;  %v689_v41 = vadd.f32 %v685_v48, %v2046_v37  ;;  %v686_v42 = vadd.f32 %v682_v52, %v2051_v39  ;;  %v945_v36 = vld [vmem:[#allocation7 + $0x38] sm:$0x1]  ;;  %v947_v37 = vld [vmem:[#allocation8] sm:$0x1]  ;;  %v873_v39 = vpop.permute.xlu0 %872  ;;  %v865_v60 = vpop.permute.xlu1 %864 }
 0x3cb   : > { %v1317_v61 = vpop.f32.mrf.mxu1 }
 0x3cc   : > { %v821_v19 = vadd.f32 %v1317_v61, %v719_v7 }
 0x3cd   : > { %v812_v62 = vpop.f32.mrf.mxu1 }
 0x3ce   : > { %v845_v28 = vmax.f32 %v821_v19, 0.0  ;;  %v813_v29 = vadd.f32 %v812_v62, %v709_v18  ;;  %v861_v58 = vpop.permute.xlu0 %860 }
 0x3cf   : > { %v1318_v0 = vpop.f32.mrf.mxu1 }
 0x3d0   : > { %v824_v14 = vadd.f32 %v1318_v0, %v724_v59  ;;  %v843_v40 = vmax.f32 %v813_v29, 0.0 }
 0x3d1   : > { %v815_v2 = vpop.f32.mrf.mxu1 }
 0x3d2   : > { %v846_v24 = vmax.f32 %v824_v14, 0.0  ;;  %v816_v25 = vadd.f32 %v815_v2, %v714_v63 }
 0x3d3   : > { %v1321_v4 = vpop.f32.mrf.mxu1 }
 0x3d4   : > { %v837_v8 = vadd.f32 %v1321_v4, %v739_v54  ;;  %v856_v33 = vpack.c.bf16 %v846_v24, %v845_v28  ;;  %v844_v34 = vmax.f32 %v816_v25, 0.0  ;;  %v949_v54 = vpack.c.bf16 %v689_v41, %v688_v43 }
 0x3d5   : > { %v828_v6 = vpop.f32.mrf.mxu1 }
 0x3d6   : > { %v829_v10 = vadd.f32 %v828_v6, %v729_v55  ;;  %v849_v15 = vmax.f32 %v837_v8, 0.0  ;;  %v855_v51 = vpack.c.bf16 %v844_v34, %v843_v40  ;;  %v687_v55 = vadd.f32 %v683_v53, %v2048_v38  ;;  %v946_v8 = vld [vmem:[#allocation7 + $0x40] sm:$0x1] }
 0x3d7   : > { %v1322_v9 = vpop.f32.mrf.mxu1 }
 0x3d8   : > { %v840_v11 = vadd.f32 %v1322_v9, %v744_v1  ;;  %v847_v20 = vmax.f32 %v829_v10, 0.0  ;;  %v948_v45 = vpack.c.bf16 %v687_v55, %v686_v42 }
 0x3d9   : > { %v831_v12 = vpop.f32.mrf.mxu1 }
 0x3da   : > { %v850_v16 = vmax.f32 %v840_v11, 0.0  ;;  %v832_v17 = vadd.f32 %v831_v12, %v734_v46  ;;  %v1664_v46 = vmov 5  }
 0x3db   : > { %1453 = vset.pattern.permute.xlu0 %v1664_v46 }
 0x3dc   : > { %v858_v21 = vpack.c.bf16 %v850_v16, %v849_v15  ;;  %v848_v22 = vmax.f32 %v832_v17, 0.0  ;;  %1040 = vperm.xlu0 %1453, %v947_v37  }
 0x3de   : > { %v857_v26 = vpack.c.bf16 %v848_v22, %v847_v20  ;;  %1323 = vmatprep.subr.bf16.mxu0 %v858_v21 }
 0x3df   : > { %1324 = vmatpush3.bf16.msra.mxu0 %v858_v21 }
 0x3e0   : > { %1325 = vmatprep.subr.bf16.mxu0 %v857_v26 }
 0x3e3   : > { %1326 = vmatpush3.bf16.msra.mxu0 %v857_v26 }
 0x3e4   : > { %1327 = vmatprep.subr.bf16.mxu0 %v856_v33 }
 0x3e7   : > { %1328 = vmatpush3.bf16.msra.mxu0 %v856_v33 }
 0x3e8   : > { %1329 = vmatprep.subr.bf16.mxu0 %v855_v51 }
 0x3eb   : > { %1330 = vmatpush3.bf16.msra.mxu0 %v855_v51 }
 0x3ec   : > { %1343 = vmatprep.subr.bf16.mxu0 %v1657_v35 }
 0x3ee   : > { %1332 = vmatmul.mubr.msk.bf16.vlgmr.msra.gmra.mxu0 %vm885_vm10, %v1463_v44 }
 0x3ef   : > { %1344 = vmatpush3.bf16.msra.mxu0 %v949_v54  ;;  %1347 = vmatprep.mubr.msk.bf16.mxu0 %vm1658_vm6, %v1657_v35 }
 0x3f0   : > { %1345 = vmatprep.subr.bf16.mxu0 %v1657_v35 }
 0x3f3   : > { %1346 = vmatpush3.bf16.msra.mxu0 %v948_v45 }
 0x3f6   : > { %1348 = vmatmul.mubr.msk.bf16.vlgmr.msra.gmra.mxu0 %vm445_vm9, %v945_v36 }
 0x457   : > { %v1041_v14 = vpop.permute.xlu0 %1040 }
 0x4ae   : > { %v1333_v56 = vpop.f32.mrf.mxu0 }
 0x4af   : > { %v935_v57 = vadd.f32 %v1333_v56, %v869_v13 }
 0x4b0   : > { %v926_v38 = vpop.f32.mrf.mxu0 }
 0x4b1   : > { %v943_v63 = vmax.f32 %v935_v57, 0.0  ;;  %v927_v0 = vadd.f32 %v926_v38, %v861_v58 }
 0x4b2   : > { %v1334_v59 = vpop.f32.mrf.mxu0 }
 0x4b3   : > { %v938_v61 = vadd.f32 %v1334_v59, %v873_v39  ;;  %v941_v6 = vmax.f32 %v927_v0, 0.0 }
 0x4b4   : > { %v929_v62 = vpop.f32.mrf.mxu0 }
 0x4b5   : > { %v944_v1 = vmax.f32 %v938_v61, 0.0  ;;  %v930_v2 = vadd.f32 %v929_v62, %v865_v60 }
 0x4b6   : > { %v1032_v9 = vpop.f32.mrf.mxu0 }
 0x4b7   : > { %v951_v4 = vpack.c.bf16 %v944_v1, %v943_v63  ;;  %v942_v5 = vmax.f32 %v930_v2, 0.0 }
 0x4b8   : > { %v1349_v10 = vpop.f32.mrf.mxu0 }
 0x4b9   : > { %1336 = vmatpush3.bf16.msra.mxu1 %v951_v4  ;;  %v950_v7 = vpack.c.bf16 %v942_v5, %v941_v6 }
 0x4ba   : > { %1337 = vmatprep.subr.bf16.mxu1 %v1657_v35  ;;  %v1035_v11 = vpop.f32.mrf.mxu0 }
 0x4bc   : > { %v1350_v12 = vpop.f32.mrf.mxu0 }
 0x4bd   : > { %1338 = vmatpush3.bf16.msra.mxu1 %v950_v7 }
 0x4c0   : > { %1340 = vmatmul.mubr.msk.bf16.vlgmr.msra.gmra.mxu1 %vm445_vm9, %v946_v8 }
 0x580   : > { %v989_v13 = vpop.f32.mrf.mxu1 }
 0x581   : > { %v1033_v15 = vadd.f32 %v1032_v9, %v989_v13 }
 0x582   : > { %v1341_v16 = vpop.f32.mrf.mxu1 }
 0x583   : > { %v1043_v17 = vadd.f32 %v1041_v14, %v1033_v15 }
 0x584   : > { %v992_v18 = vpop.f32.mrf.mxu1 }
 0x585   : > { %v1226_v19 = vmul.f32 -1.442695, %v1043_v17 }
 0x586   : > { %v1342_v35 = vpop.f32.mrf.mxu1 }
 0x587   : > { %1464 = vpow2.f32 %v1226_v19 }
 0x594   : > { %v1465_v20 = vpop.eup %1464 }
 0x595   : > { %v1047_v21 = vadd.f32 1.0, %v1465_v20 }
 0x597   : > { %1466 = vrcp.f32 %v1047_v21 }
 0x5a4   : > { %v1467_v22 = vpop.eup %1466 }
 0x5a5   : > { %1050 = vst [vmem:[%s255_s23] sm:$0x1] %v1467_v22 }
 0x5a6   : > { %1587 = shalt.err (!%p1584_p9)
}
 0x5a7   : > { %s1588_s26 = scalar_lea.hbm %s2093_s14, 16  ;;  %s1592_s11 = scalar_lea.hbm %s2134_s4, 32 }
 0x5a8   : > { %p1589_p13 = scmp.ne.s32.totalorder %s2093_s14, %s1588_s26  ;;  %p1593_p10 = scmp.lt.s32.totalorder %s2093_s14, %s2134_s4 }
 0x5a9   : > { %p1594_p11 = scmp.lt.s32.totalorder %s1592_s11, %s1588_s26 }
 0x5aa   : > { %p1590_p1 = pnand %p1589_p13, %p2172_p6 }
 0x5ab   : > { %p1595_p2 = por %p1594_p11, %p1593_p10 }
 0x5ac   : > { %p1591_p8 = pneg %p1590_p1 }
 0x5ae   : > { %p1596_p4 = pnand %p1595_p2, %p1591_p8 }
 0x5b0   : > { %1599 = shalt.err (!%p1596_p4)
}
 0x5b1   : > { %1365 = dma.vmem_to_hbm [thread:$0]  (%p2172_p6), %s1065_s10, 16, %s2093_s14, %s1052_s28  }
 0x5b2 PF: > { %s1076_s25 = sand.u32 1, %s1634_s15   ;;  %p2173_p12 = scmp.ne.s32.totalorder %s2140_s22, 0 }
 0x5b3   : > { %p2174_p0 = scmp.ge.s32.totalorder %s1646_s18, 2  ;;  %s1077_s21 = scalar_lea.sflag [#allocation4], %s1076_s25 }
 0x5b5   : > { %p1382_p5 = pnand %p2174_p0, %p2173_p12 }
 0x5b7   : > { %p1383_p3 = pneg %p1382_p5 }
 0x5b9   : > { %1629 = dma.done.wait (%p1383_p3), %s1077_s21, 16  }
 0x5ba   : > { %1631 = vsyncadd (%p1383_p3), %s1077_s21, 4294967280  ;;  %p19_p7 = scmp.ge.s32.totalorder %s1771_s27, 4   ;;  %s2175_s15 = smov %s1638_s16 }
 0x5bb   : > { %s2176_s16 = smov %s1642_s17  ;;  %s2177_s17 = smov %s1781_s5 }
 0x5bc   : > { %s2178_s18 = smov %s1771_s27  ;;  %21 = sbr.rel (!%p19_p7) target bundleno = 7 (0x7), region = 93 }
 0x5c1   :  { %1081 = vsyncpa [#allocation3], 1 }
 0x5c2   :  { %1083 = vsyncpa [#allocation3 + $0x1], 1 }
 0x5c3   :  { %1084 = vsyncpa [#allocation6], 1 }
 0x5c4   :  { %1085 = vsyncpa [#allocation9], 1 }
 0x5c5   :  { %1086 = vsyncpa [#allocation4], 1 }
 0x5c6   :  { %1088 = vsyncpa [#allocation4 + $0x1], 1 }

</bundles_post_ra>
